<compile_context>
chip_gen: v7x
topology: tpu7x:2x2x1
jax: 0.10.0
libtpu: 0.0.40
codegen_flags: <defaults>
</compile_context>

<pallas_src>
import functools

import jax
import jax.numpy as jnp
import numpy as np
from jax import lax
from jax.experimental import pallas as pl
from jax.experimental.pallas import tpu as pltpu


def _round_up(x, m):
  return ((x + m - 1) // m) * m


def _pick_tile(n_pad, target, base=128):
  """Largest multiple of `base` that divides `n_pad` and is <= max(target, base)."""
  for k in range(max(target, base) // base, 0, -1):
    t = k * base
    if n_pad % t == 0:
      return t
  return base


# -----------------------------------------------------------------------------
# Phase 1: conv_out = ReLU(BN-folded 1x1 conv); fused q/k/v projection with
#          separate lane-dense outputs.
# -----------------------------------------------------------------------------
def _conv_qkv_kernel(x_ref, wc_ref, bc_ref, wqkv_ref, bqkv_ref,
                     conv_ref, q_ref, k_ref, v_ref, *, cq_pad, compute_dtype):
  # x_ref:    (1, tm, Cin)   input tokens                          (compute_dtype)
  # wc_ref:   (Cin, C)       BN-folded 1x1 conv weight             (compute_dtype)
  # bc_ref:   (1, C)         BN-folded bias                        (f32)
  # wqkv_ref: (C, D)         concat [Wq | Wk | Wv], D = 2*cq_pad+C (compute_dtype)
  # bqkv_ref: (1, D)         concat [bq | bk | bv]                 (f32)
  x = x_ref[0]
  h = jnp.dot(x, wc_ref[...], preferred_element_type=jnp.float32)
  h = jnp.maximum(h + bc_ref[...], 0.0)                 # ReLU(BN(conv(x))), f32
  conv_ref[0] = h.astype(conv_ref.dtype)
  qkv = jnp.dot(h.astype(compute_dtype), wqkv_ref[...],
                preferred_element_type=jnp.float32) + bqkv_ref[...]
  q_ref[0] = qkv[:, :cq_pad].astype(q_ref.dtype)
  k_ref[0] = qkv[:, cq_pad:2 * cq_pad].astype(k_ref.dtype)
  v_ref[0] = qkv[:, 2 * cq_pad:].astype(v_ref.dtype)


def _conv_qkv_pallas(x_tok, wc, bc, wqkv, bqkv, *, tile_m, cq_pad, compute_dtype):
  B, Np, Cin = x_tok.shape
  C = wc.shape[1]
  D = wqkv.shape[1]
  kernel = functools.partial(_conv_qkv_kernel, cq_pad=cq_pad,
                             compute_dtype=compute_dtype)
  return pl.pallas_call(
      kernel,
      out_shape=(jax.ShapeDtypeStruct((B, Np, C), compute_dtype),       # conv_out
                 jax.ShapeDtypeStruct((B, Np, cq_pad), compute_dtype),  # q
                 jax.ShapeDtypeStruct((B, Np, cq_pad), compute_dtype),  # k
                 jax.ShapeDtypeStruct((B, Np, C), compute_dtype)),      # v
      grid=(B, Np // tile_m),
      in_specs=[
          pl.BlockSpec((1, tile_m, Cin), lambda b, i: (b, i, 0)),
          pl.BlockSpec((Cin, C), lambda b, i: (0, 0)),     # resident weight
          pl.BlockSpec((1, C), lambda b, i: (0, 0)),
          pl.BlockSpec((C, D), lambda b, i: (0, 0)),       # resident fused weight
          pl.BlockSpec((1, D), lambda b, i: (0, 0)),
      ],
      out_specs=(
          pl.BlockSpec((1, tile_m, C), lambda b, i: (b, i, 0)),
          pl.BlockSpec((1, tile_m, cq_pad), lambda b, i: (b, i, 0)),
          pl.BlockSpec((1, tile_m, cq_pad), lambda b, i: (b, i, 0)),
          pl.BlockSpec((1, tile_m, C), lambda b, i: (b, i, 0)),
      ),
      compiler_params=pltpu.CompilerParams(
          dimension_semantics=("parallel", "parallel"),
          vmem_limit_bytes=48 * 1024 * 1024),
  )(x_tok, wc, bc, wqkv, bqkv)


# -----------------------------------------------------------------------------
# Phase 2: self-attention with batch-resident K/V, in-kernel online softmax over
#          kv chunks, and fused residual epilogue:
#   out = 2 * conv_out + gamma * softmax(q k^T, axis=keys) @ v
# -----------------------------------------------------------------------------
def _attn_kernel(gamma_ref, q_ref, k_ref, v_ref, conv_ref, o_ref, *,
                 kv_chunk, n_valid, compute_dtype):
  n_pad = k_ref.shape[1]            # static
  n_chunks = n_pad // kv_chunk      # static
  tq = q_ref.shape[1]
  c = v_ref.shape[-1]

  q = q_ref[0].astype(compute_dtype)                         # (tq, Cqp)

  def body(j, carry):
    m_prev, l_prev, acc_prev = carry
    start = pl.multiple_of(j * kv_chunk, kv_chunk)
    kc = k_ref[0, pl.ds(start, kv_chunk), :].astype(compute_dtype)   # (tk, Cqp)
    vc = v_ref[0, pl.ds(start, kv_chunk), :].astype(compute_dtype)   # (tk, C)
    # s[n, m] = <q[n], k[m]>: contract channel axes of both -> no transpose.
    s = lax.dot_general(q, kc, (((1,), (1,)), ((), ())),
                        preferred_element_type=jnp.float32)          # (tq, tk) f32
    if n_valid < n_pad:   # static check: mask padded key columns
      col = start + lax.broadcasted_iota(jnp.int32, s.shape, 1)
      s = jnp.where(col < n_valid, s, jnp.float32(-1e30))
    m_new = jnp.maximum(m_prev, jnp.max(s, axis=-1, keepdims=True))  # (tq, 1)
    alpha = jnp.exp(m_prev - m_new)                                  # f32 (EUP)
    p = jnp.exp(s - m_new)                                           # f32 (EUP)
    l_new = alpha * l_prev + jnp.sum(p, axis=-1, keepdims=True)
    acc_new = alpha * acc_prev + jnp.dot(
        p.astype(compute_dtype), vc, preferred_element_type=jnp.float32)
    return m_new, l_new, acc_new

  init = (jnp.full((tq, 1), -jnp.inf, jnp.float32),   # running max
          jnp.zeros((tq, 1), jnp.float32),            # running denominator
          jnp.zeros((tq, c), jnp.float32))            # output accumulator
  _, l_fin, acc_fin = lax.fori_loop(0, n_chunks, body, init)

  inv_l = pl.reciprocal(l_fin, approx=True)                          # EUP, ~free
  att = acc_fin * inv_l                                              # (tq, C)
  gamma = gamma_ref[0, 0]                                            # scalar (SMEM)
  out = 2.0 * conv_ref[0].astype(jnp.float32) + gamma * att
  o_ref[0] = out.astype(o_ref.dtype)


def _attention_pallas(gamma, q, k, v, conv_out, *, tile_q, kv_chunk, n_valid,
                      compute_dtype, out_dtype):
  B, Np, Cqp = q.shape
  C = v.shape[-1]
  n_q = Np // tile_q
  kernel = functools.partial(_attn_kernel, kv_chunk=kv_chunk, n_valid=n_valid,
                             compute_dtype=compute_dtype)
  itm = q.dtype.itemsize
  cost = pl.CostEstimate(
      flops=int(2 * B * Np * Np * (Cqp + C)),
      transcendentals=int(B * Np * Np),
      bytes_accessed=int((q.size + k.size + v.size + conv_out.size) * itm
                         + B * Np * C * np.dtype(out_dtype).itemsize),
  )
  return pl.pallas_call(
      kernel,
      out_shape=jax.ShapeDtypeStruct((B, Np, C), out_dtype),
      grid=(B, n_q),
      in_specs=[
          pl.BlockSpec(memory_space=pltpu.MemorySpace.SMEM),        # gamma (1,1)
          pl.BlockSpec((1, tile_q, Cqp), lambda b, i: (b, i, 0)),   # q
          # K/V blocks span the whole sequence and their index depends only on
          # the batch coordinate -> DMA'd once per batch, VMEM-resident across
          # all q tiles (no per-q-tile re-streaming, no kv grid overhead).
          pl.BlockSpec((1, Np, Cqp), lambda b, i: (b, 0, 0)),       # k (resident)
          pl.BlockSpec((1, Np, C), lambda b, i: (b, 0, 0)),         # v (resident)
          pl.BlockSpec((1, tile_q, C), lambda b, i: (b, i, 0)),     # conv_out
      ],
      out_specs=pl.BlockSpec((1, tile_q, C), lambda b, i: (b, i, 0)),
      compiler_params=pltpu.CompilerParams(
          dimension_semantics=("parallel", "parallel"),
          vmem_limit_bytes=48 * 1024 * 1024),
      cost_estimate=cost,
  )(gamma, q, k, v, conv_out)


# -----------------------------------------------------------------------------
# Wrapper
# -----------------------------------------------------------------------------
def aspp_module_forward(x, params, *, tile_q=256, tile_k=256, tile_m=512,
                        compute_dtype=jnp.bfloat16, out_dtype=jnp.float32,
                        bn_eps=1e-5):
  """ASPPModule (dilation=None, is_pooling=False): 2*conv_out + gamma*attention."""
  B, Cin, H, W = x.shape
  w_conv = params["w_conv"]                       # (C, Cin), PyTorch layout
  C = w_conv.shape[0]
  Cq = params["w_q"].shape[0]
  N = H * W

  # --- fold eval-mode BatchNorm into the bias-free 1x1 conv (host side) -------
  scale = params["bn_gamma"] / jnp.sqrt(params["bn_var"] + bn_eps)          # (C,)
  wc = (w_conv * scale[:, None]).T.astype(compute_dtype)                    # (Cin, C)
  bc = (params["bn_beta"] - params["bn_mean"] * scale).reshape(1, C)
  bc = bc.astype(jnp.float32)

  # --- pad q/k projections to a lane-dense width (zero rows: <q,k> unchanged) -
  cq_pad = max(128, _round_up(Cq, 128))
  pad_w = lambda w: jnp.pad(w, ((0, cq_pad - Cq), (0, 0)))
  pad_b = lambda b: jnp.pad(b, (0, cq_pad - Cq))
  wqkv = jnp.concatenate(
      [pad_w(params["w_q"]).T, pad_w(params["w_k"]).T, params["w_v"].T],
      axis=1).astype(compute_dtype)                         # (C, 2*cq_pad + C)
  bqkv = jnp.concatenate(
      [pad_b(params["b_q"]), pad_b(params["b_k"]), params["b_v"]]
  ).reshape(1, -1).astype(jnp.float32)

  # --- NCHW -> (B, N, Cin) tokens, zero-pad N to a multiple of 128 ------------
  x_tok = jnp.transpose(x, (0, 2, 3, 1)).reshape(B, N, Cin).astype(compute_dtype)
  n_pad = _round_up(N, 128)
  if n_pad != N:
    x_tok = jnp.pad(x_tok, ((0, 0), (0, n_pad - N), (0, 0)))

  tm = _pick_tile(n_pad, tile_m)
  tq = _pick_tile(n_pad, tile_q)
  kv_chunk = _pick_tile(n_pad, tile_k)

  # Phase 1: conv_out + separate lane-dense q/k/v, computed once per token.
  conv_out, q, k, v = _conv_qkv_pallas(
      x_tok, wc, bc, wqkv, bqkv,
      tile_m=tm, cq_pad=cq_pad, compute_dtype=compute_dtype)

  gamma = params["gamma"].reshape(1, 1).astype(jnp.float32)

  # Phase 2: batch-resident K/V flash attention + fused residual epilogue.
  y_tok = _attention_pallas(
      gamma, q, k, v, conv_out, tile_q=tq, kv_chunk=kv_chunk, n_valid=N,
      compute_dtype=compute_dtype, out_dtype=out_dtype)

  y_tok = y_tok[:, :N, :]                                    # drop padded rows
  return y_tok.reshape(B, H, W, C).transpose(0, 3, 1, 2)     # back to NCHW


# -----------------------------------------------------------------------------
# Pure-JAX f32 reference (exact PyTorch math, eval-mode BN)
# -----------------------------------------------------------------------------
def reference_forward(x, params, bn_eps=1e-5):
  B, Cin, H, W = x.shape
  C = params["w_conv"].shape[0]
  N = H * W
  scale = params["bn_gamma"] / jnp.sqrt(params["bn_var"] + bn_eps)
  wc = params["w_conv"] * scale[:, None]                                   # (C, Cin)
  bc = params["bn_beta"] - params["bn_mean"] * scale
  xt = x.reshape(B, Cin, N)
  conv = jnp.einsum("oc,bcn->bon", wc, xt) + bc[None, :, None]
  conv = jnp.maximum(conv, 0.0)                                            # (B, C, N)
  q = jnp.einsum("oc,bcn->bon", params["w_q"], conv) + params["b_q"][None, :, None]
  k = jnp.einsum("oc,bcn->bon", params["w_k"], conv) + params["b_k"][None, :, None]
  v = jnp.einsum("oc,bcn->bon", params["w_v"], conv) + params["b_v"][None, :, None]
  energy = jnp.einsum("bcn,bcm->bnm", q, k)                                # (B, N, N)
  attn = jax.nn.softmax(energy, axis=-1)
  att_out = jnp.einsum("bcm,bnm->bcn", v, attn)
  y = 2.0 * conv + params["gamma"] * att_out          # conv_out + attn_out
  return y.reshape(B, C, H, W)


def _make_params(key, Cin, C):
  Cq = C // 8
  ks = jax.random.split(key, 12)
  return {
      "w_conv": jax.random.normal(ks[0], (C, Cin), jnp.float32) * 0.2,
      "bn_gamma": jax.random.uniform(ks[1], (C,), jnp.float32, 0.5, 1.5),
      "bn_beta": jax.random.normal(ks[2], (C,), jnp.float32) * 0.1,
      "bn_mean": jax.random.normal(ks[3], (C,), jnp.float32) * 0.1,
      "bn_var": jax.random.uniform(ks[4], (C,), jnp.float32, 0.5, 1.5),
      "w_q": jax.random.normal(ks[5], (Cq, C), jnp.float32) * 0.2,
      "b_q": jax.random.normal(ks[6], (Cq,), jnp.float32) * 0.1,
      "w_k": jax.random.normal(ks[7], (Cq, C), jnp.float32) * 0.2,
      "b_k": jax.random.normal(ks[8], (Cq,), jnp.float32) * 0.1,
      "w_v": jax.random.normal(ks[9], (C, C), jnp.float32) * 0.2,
      "b_v": jax.random.normal(ks[10], (C,), jnp.float32) * 0.1,
      # gamma is zero-initialized in the PyTorch module; use a non-zero value
      # here so the attention path is actually exercised.
      "gamma": jnp.full((1,), 0.75, jnp.float32),
  }


if __name__ == "__main__":
  key = jax.random.PRNGKey(0)
  cases = [
      # (B, Cin, C, H, W, tile_q, tile_k, tile_m)
      (2, 16, 32, 16, 16, 128, 128, 128),  # aligned: N=256 -> 2 q tiles, 2 kv chunks
      (1, 8, 32, 10, 10, 128, 128, 128),   # ragged: N=100 -> padded to 128, key mask
  ]
  for idx, (B, Cin, C, H, W, tq, tk, tm) in enumerate(cases):
    k_case, k_x = jax.random.split(jax.random.fold_in(key, idx))
    params = _make_params(k_case, Cin, C)
    x = jax.random.normal(k_x, (B, Cin, H, W), jnp.float32)

    y = jax.block_until_ready(
        aspp_module_forward(x, params, tile_q=tq, tile_k=tk, tile_m=tm))
    y_ref = jax.block_until_ready(reference_forward(x, params))

    err = float(jnp.max(jnp.abs(y - y_ref)))
    ref_scale = float(jnp.max(jnp.abs(y_ref)))
    tol = 5e-2 * max(1.0, ref_scale)   # loose: kernel uses bf16 MXU operands
    if not np.isfinite(err) or err > tol:
      raise AssertionError(
          f"case {idx}: max|diff|={err:.4e}, max|ref|={ref_scale:.4e}, tol={tol:.4e}")
  print("KERNEL_OK")
</pallas_src>

<mosaic_0001>
module attributes {stable_mosaic.version = 11 : i64} {
  func.func @_conv_qkv_kernel(%arg0: i32, %arg1: i32, %arg2: memref<1x128x16xbf16, #tpu.memory_space<vmem>>, %arg3: memref<16x32xbf16, #tpu.memory_space<vmem>>, %arg4: memref<1x32xf32, #tpu.memory_space<vmem>>, %arg5: memref<32x288xbf16, #tpu.memory_space<vmem>>, %arg6: memref<1x288xf32, #tpu.memory_space<vmem>>, %arg7: memref<1x128x32xbf16, #tpu.memory_space<vmem>>, %arg8: memref<1x128x128xbf16, #tpu.memory_space<vmem>>, %arg9: memref<1x128x128xbf16, #tpu.memory_space<vmem>>, %arg10: memref<1x128x32xbf16, #tpu.memory_space<vmem>>) attributes {dimension_semantics = [#tpu.dimension_semantics<parallel>, #tpu.dimension_semantics<parallel>], iteration_bounds = array<i64: 2, 2>, scalar_prefetch = 0 : i64, scratch_operands = 0 : i64, tpu.core_type = #tpu.core_type<tc>, window_params = [{transform_indices = @transform_0, window_bounds = array<i64: 1, 128, 16>}, {pipeline_mode = #tpu.pipeline_mode<synchronous>, transform_indices = @transform_1, window_bounds = array<i64: 16, 32>}, {pipeline_mode = #tpu.pipeline_mode<synchronous>, transform_indices = @transform_2, window_bounds = array<i64: 1, 32>}, {pipeline_mode = #tpu.pipeline_mode<synchronous>, transform_indices = @transform_3, window_bounds = array<i64: 32, 288>}, {pipeline_mode = #tpu.pipeline_mode<synchronous>, transform_indices = @transform_4, window_bounds = array<i64: 1, 288>}, {transform_indices = @transform_5, window_bounds = array<i64: 1, 128, 32>}, {transform_indices = @transform_6, window_bounds = array<i64: 1, 128, 128>}, {transform_indices = @transform_7, window_bounds = array<i64: 1, 128, 128>}, {transform_indices = @transform_8, window_bounds = array<i64: 1, 128, 32>}]} {
    %c0 = arith.constant 0 : index
    %c0_0 = arith.constant 0 : index
    %c0_1 = arith.constant 0 : index
    %0 = vector.load %arg2[%c0, %c0_0, %c0_1] : memref<1x128x16xbf16, #tpu.memory_space<vmem>>, vector<1x128x16xbf16>
    %1 = vector.shape_cast %0 : vector<1x128x16xbf16> to vector<128x16xbf16>
    %c0_2 = arith.constant 0 : index
    %c0_3 = arith.constant 0 : index
    %2 = vector.load %arg3[%c0_2, %c0_3] : memref<16x32xbf16, #tpu.memory_space<vmem>>, vector<16x32xbf16>
    %cst = arith.constant dense<0.000000e+00> : vector<128x32xf32>
    %3 = tpu.matmul %1, %2, %cst {dimension_numbers = #tpu.dot_dimension_numbers<[1], [0], [0], [1], [0, 0, 1, 1], [], []>} : vector<128x16xbf16>, vector<16x32xbf16>, vector<128x32xf32> -> vector<128x32xf32>
    %c0_4 = arith.constant 0 : index
    %c0_5 = arith.constant 0 : index
    %4 = vector.load %arg4[%c0_4, %c0_5] : memref<1x32xf32, #tpu.memory_space<vmem>>, vector<1x32xf32>
    %5 = vector.broadcast %4 : vector<1x32xf32> to vector<128x32xf32>
    %6 = arith.addf %3, %5 : vector<128x32xf32>
    %cst_6 = arith.constant 0.000000e+00 : f32
    %7 = vector.broadcast %cst_6 : f32 to vector<128x32xf32>
    %8 = arith.maximumf %6, %7 : vector<128x32xf32>
    %9 = arith.truncf %8 : vector<128x32xf32> to vector<128x32xbf16>
    %c0_7 = arith.constant 0 : index
    %c0_8 = arith.constant 0 : index
    %c0_9 = arith.constant 0 : index
    %10 = vector.load %arg7[%c0_7, %c0_8, %c0_9] : memref<1x128x32xbf16, #tpu.memory_space<vmem>>, vector<1x128x32xbf16>
    %11 = vector.shape_cast %10 : vector<1x128x32xbf16> to vector<128x32xbf16>
    %12 = vector.shape_cast %9 : vector<128x32xbf16> to vector<1x128x32xbf16>
    tpu.vector_store %arg7[%c0_7, %c0_8, %c0_9], %12 {strides = array<i32>} : memref<1x128x32xbf16, #tpu.memory_space<vmem>>, vector<1x128x32xbf16>,
    %13 = arith.truncf %8 : vector<128x32xf32> to vector<128x32xbf16>
    %c0_10 = arith.constant 0 : index
    %c0_11 = arith.constant 0 : index
    %14 = vector.load %arg5[%c0_10, %c0_11] : memref<32x288xbf16, #tpu.memory_space<vmem>>, vector<32x288xbf16>
    %cst_12 = arith.constant dense<0.000000e+00> : vector<128x288xf32>
    %15 = tpu.matmul %13, %14, %cst_12 {dimension_numbers = #tpu.dot_dimension_numbers<[1], [0], [0], [1], [0, 0, 1, 1], [], []>} : vector<128x32xbf16>, vector<32x288xbf16>, vector<128x288xf32> -> vector<128x288xf32>
    %c0_13 = arith.constant 0 : index
    %c0_14 = arith.constant 0 : index
    %16 = vector.load %arg6[%c0_13, %c0_14] : memref<1x288xf32, #tpu.memory_space<vmem>>, vector<1x288xf32>
    %17 = vector.broadcast %16 : vector<1x288xf32> to vector<128x288xf32>
    %18 = arith.addf %15, %17 : vector<128x288xf32>
    %19 = vector.extract_strided_slice %18 {offsets = [0, 0], sizes = [128, 128], strides = [1, 1]} : vector<128x288xf32> to vector<128x128xf32>
    %20 = arith.truncf %19 : vector<128x128xf32> to vector<128x128xbf16>
    %c0_15 = arith.constant 0 : index
    %c0_16 = arith.constant 0 : index
    %c0_17 = arith.constant 0 : index
    %21 = vector.load %arg8[%c0_15, %c0_16, %c0_17] : memref<1x128x128xbf16, #tpu.memory_space<vmem>>, vector<1x128x128xbf16>
    %22 = vector.shape_cast %21 : vector<1x128x128xbf16> to vector<128x128xbf16>
    %23 = vector.shape_cast %20 : vector<128x128xbf16> to vector<1x128x128xbf16>
    tpu.vector_store %arg8[%c0_15, %c0_16, %c0_17], %23 {strides = array<i32>} : memref<1x128x128xbf16, #tpu.memory_space<vmem>>, vector<1x128x128xbf16>,
    %24 = vector.extract_strided_slice %18 {offsets = [0, 128], sizes = [128, 128], strides = [1, 1]} : vector<128x288xf32> to vector<128x128xf32>
    %25 = arith.truncf %24 : vector<128x128xf32> to vector<128x128xbf16>
    %c0_18 = arith.constant 0 : index
    %c0_19 = arith.constant 0 : index
    %c0_20 = arith.constant 0 : index
    %26 = vector.load %arg9[%c0_18, %c0_19, %c0_20] : memref<1x128x128xbf16, #tpu.memory_space<vmem>>, vector<1x128x128xbf16>
    %27 = vector.shape_cast %26 : vector<1x128x128xbf16> to vector<128x128xbf16>
    %28 = vector.shape_cast %25 : vector<128x128xbf16> to vector<1x128x128xbf16>
    tpu.vector_store %arg9[%c0_18, %c0_19, %c0_20], %28 {strides = array<i32>} : memref<1x128x128xbf16, #tpu.memory_space<vmem>>, vector<1x128x128xbf16>,
    %29 = vector.extract_strided_slice %18 {offsets = [0, 256], sizes = [128, 32], strides = [1, 1]} : vector<128x288xf32> to vector<128x32xf32>
    %30 = arith.truncf %29 : vector<128x32xf32> to vector<128x32xbf16>
    %c0_21 = arith.constant 0 : index
    %c0_22 = arith.constant 0 : index
    %c0_23 = arith.constant 0 : index
    %31 = vector.load %arg10[%c0_21, %c0_22, %c0_23] : memref<1x128x32xbf16, #tpu.memory_space<vmem>>, vector<1x128x32xbf16>
    %32 = vector.shape_cast %31 : vector<1x128x32xbf16> to vector<128x32xbf16>
    %33 = vector.shape_cast %30 : vector<128x32xbf16> to vector<1x128x32xbf16>
    tpu.vector_store %arg10[%c0_21, %c0_22, %c0_23], %33 {strides = array<i32>} : memref<1x128x32xbf16, #tpu.memory_space<vmem>>, vector<1x128x32xbf16>,
    return
  }
  func.func @transform_0(%arg0: i32, %arg1: i32) -> (i32, i32, i32) {
    %c0_i32 = arith.constant 0 : i32
    %c0_i32_0 = arith.constant 0 : i32
    return %arg0, %arg1, %c0_i32 : i32, i32, i32
  }
  func.func @transform_1(%arg0: i32, %arg1: i32) -> (i32, i32) {
    %c0_i32 = arith.constant 0 : i32
    %c0_i32_0 = arith.constant 0 : i32
    %c0_i32_1 = arith.constant 0 : i32
    return %c0_i32, %c0_i32_0 : i32, i32
  }
  func.func @transform_2(%arg0: i32, %arg1: i32) -> (i32, i32) {
    %c0_i32 = arith.constant 0 : i32
    %c0_i32_0 = arith.constant 0 : i32
    %c0_i32_1 = arith.constant 0 : i32
    return %c0_i32, %c0_i32_0 : i32, i32
  }
  func.func @transform_3(%arg0: i32, %arg1: i32) -> (i32, i32) {
    %c0_i32 = arith.constant 0 : i32
    %c0_i32_0 = arith.constant 0 : i32
    %c0_i32_1 = arith.constant 0 : i32
    return %c0_i32, %c0_i32_0 : i32, i32
  }
  func.func @transform_4(%arg0: i32, %arg1: i32) -> (i32, i32) {
    %c0_i32 = arith.constant 0 : i32
    %c0_i32_0 = arith.constant 0 : i32
    %c0_i32_1 = arith.constant 0 : i32
    return %c0_i32, %c0_i32_0 : i32, i32
  }
  func.func @transform_5(%arg0: i32, %arg1: i32) -> (i32, i32, i32) {
    %c0_i32 = arith.constant 0 : i32
    %c0_i32_0 = arith.constant 0 : i32
    return %arg0, %arg1, %c0_i32 : i32, i32, i32
  }
  func.func @transform_6(%arg0: i32, %arg1: i32) -> (i32, i32, i32) {
    %c0_i32 = arith.constant 0 : i32
    %c0_i32_0 = arith.constant 0 : i32
    return %arg0, %arg1, %c0_i32 : i32, i32, i32
  }
  func.func @transform_7(%arg0: i32, %arg1: i32) -> (i32, i32, i32) {
    %c0_i32 = arith.constant 0 : i32
    %c0_i32_0 = arith.constant 0 : i32
    return %arg0, %arg1, %c0_i32 : i32, i32, i32
  }
  func.func @transform_8(%arg0: i32, %arg1: i32) -> (i32, i32, i32) {
    %c0_i32 = arith.constant 0 : i32
    %c0_i32_0 = arith.constant 0 : i32
    return %arg0, %arg1, %c0_i32 : i32, i32, i32
  }
}

</mosaic_0001>

<bundles_post_ra>
// kernel: tpu_custom_call.1
= control target key start
LH: loop header
LB: loop body
LE: loop exit
PB: predicated region body
PF: predicated region fallthrough
CT: control target
= control target key end

     0   :  { %s2510_s0 = inlined_call_operand.vmem [shape: bf16[2,256,16], index: 0, kind: input, shape index: {}]   ;;  %s2511_s1 = inlined_call_operand.vmem [shape: bf16[16,32], index: 1, kind: input, shape index: {}]   ;;  %s2512_s2 = inlined_call_operand.vmem [shape: f32[1,32], index: 2, kind: input, shape index: {}]   ;;  %s2513_s3 = inlined_call_operand.vmem [shape: bf16[32,288], index: 3, kind: input, shape index: {}]   ;;  %s2514_s4 = inlined_call_operand.vmem [shape: f32[1,288], index: 4, kind: input, shape index: {}]   ;;  %s2515_s5 = inlined_call_operand.vmem [shape: bf16[2,256,32], index: 5, kind: output, shape index: {0}]   ;;  %s2516_s6 = inlined_call_operand.hbm [shape: bf16[2,256,128], index: 6, kind: output, shape index: {1}]   ;;  %s2517_s7 = inlined_call_operand.hbm [shape: bf16[2,256,128], index: 7, kind: output, shape index: {2}]   ;;  %s2518_s8 = inlined_call_operand.vmem [shape: bf16[2,256,32], index: 8, kind: output, shape index: {3}]  }
   0x1   :  { %2519 = sst [smem:[#allocation8_spill]] %s2510_s0 }
   0x2   :  { %2520 = sst [smem:[#allocation9_spill]] %s2511_s1 }
   0x3   :  { %2521 = sst [smem:[#allocation10_spill]] %s2512_s2 }
   0x4   :  { %2522 = sst [smem:[#allocation11_spill]] %s2513_s3 }
   0x5   :  { %14 = vsyncpa [#allocation3], 0 }
   0x6   :  { %16 = vsyncpa [#allocation3 + $0x1], 0 }
   0x7   :  { %17 = vsyncpa [#allocation5], 0 }
   0x8   :  { %19 = vsyncpa [#allocation5 + $0x1], 0  ;;  %s2092_s27 = smov 0   ;;  %s2094_s28 = smov 0  }
   0x9   :  { %s2096_s29 = smov 0   ;;  %s2098_s30 = smov 0  }
   0xa   :  { %s2100_s9 = smov 0   ;;  %s2102_s10 = smov 0  }
   0xb   :  { %s2104_s11 = smov 0   ;;  %s2106_s12 = smov 0  }
   0xc LB: > { %s1474_s13 = sadd.s32 4294967295, %s2040_s12   ;;  %s1475_s14 = sadd.s32 4294967294, %s2040_s12   ;;  %s2040_s12 = sphi %s2106_s12, %s25_s12   ;;  %s2036_s11 = sphi %s2104_s11, %s2535_s11   ;;  %s2032_s10 = sphi %s2102_s10, %s2534_s10   ;;  %s2028_s9 = sphi %s2100_s9, %s2533_s9   ;;  %s2024_s30 = sphi %s2098_s30, %s2532_s30   ;;  %s2020_s29 = sphi %s2096_s29, %s2531_s29   ;;  %s2016_s28 = sphi %s2094_s28, %s2530_s28   ;;  %s2012_s27 = sphi %s2092_s27, %s2529_s27  }
   0xd   : > { %s34_s15 = sadd.s32 1, %s2032_s10  ;;  %s37_s16 = sadd.s32 1, %s2036_s11 }
   0xe   : > { %p35_p0 = scmp.ge.s32.totalorder %s34_s15, 2  ;;  %p196_p1 = scmp.ne.s32.totalorder %s2020_s29, %s2016_s28 }
   0xf   : > { %p197_p2 = scmp.eq.s32.totalorder %s1474_s13, 3  ;;  %p202_p5 = scmp.ne.s32.totalorder %s2016_s28, %s2012_s27 }
  0x10   : > { %s2537_s15 = smov (%p35_p0, %s34_s15), 0  ;;  %s2539_s16 = smov (!%p35_p0, %s37_s16), %s2036_s11 }
  0x11   : > { %s182_s17 = ssub.s32 %s2032_s10, %s2537_s15  ;;  %p2143_p3 = por %p197_p2, %p196_p1 }
  0x12   : > { %p39_p4 = scmp.ge.s32.totalorder %s2539_s16, 2  ;;  %p203_p6 = scmp.eq.s32.totalorder %s1475_s14, 3 }
  0x13   : > { %p1478_p7 = scmp.ge.s32.totalorder %s2040_s12, 1  ;;  %p302_p9 = scmp.lt.s32.totalorder %s2040_s12, 5 }
  0x14   : > { %s2541_s16 = smov (%p39_p4, %s2539_s16), 0  ;;  %p2152_p8 = por %p203_p6, %p202_p5 }
  0x15   : > { %s181_s20 = ssub.s32 %s2036_s11, %s2541_s16  ;;  %s186_s21 = sadd.s32 1, %s2020_s29 }
  0x16   : > { %s183_s22 = sor.u32 %s182_s17, %s181_s20  ;;  %p303_p10 = pnand %p1478_p7, %p302_p9 }
  0x17   : > { %p184_p11 = scmp.eq.s32.totalorder %s183_s22, 0  ;;  %s2525_s1 = sld [smem:[#allocation9_spill]] (!%p303_p10)  ;;  %vm467_vm0 = vcmask (!%p303_p10), 130048   ;;  %v2042_v17 = vmov (!%p303_p10), 0   ;;  %vm669_vm1 = vcmask (!%p303_p10), 257024   ;;  %vm743_vm2 = vcmask (!%p303_p10), 261120  }
  0x18   : > { %306 = sbr.rel (%p303_p10) target bundleno = 573 (0x23d), region = 40  ;;  %s2167_s26 = sshll.u32 (!%p303_p10), %s2024_s30, 4  ;;  %800 = vmatprep.mubr.bf16.mxu1 (!%p303_p10), %v2042_v17 }
  0x19   : > { %s2161_s23 = scalar_select %p184_p11, %s2020_s29, %s186_s21  }
  0x1a   : > { %p364_p12 = scmp.lt.s32.totalorder (!%p303_p10), %s2028_s9, 1  ;;  %p366_p13 = scmp.lt.s32.totalorder (!%p303_p10), %s2167_s26, 31 }
  0x1b   : > { %s2526_s0 = sld [smem:[#allocation8_spill]] (!%p303_p10)  ;;  %s2527_s3 = sld [smem:[#allocation11_spill]] (!%p303_p10) }
  0x1c   : > { %s2528_s2 = sld [smem:[#allocation10_spill]] (!%p303_p10) }
  0x1d   : > { %v1898_v0 = vld [vmem:[%s2525_s1] sm:$0xff] (!%p303_p10)  }
  0x1e   : > { %1781 = vmatprep.subr.bf16.mxu0 (!%p303_p10), %v1898_v0 }
  0x1f   : > { %1782 = vmatpush3.bf16.msra.mxu0 %v1898_v0  ;;  %s365_s13 = scalar_select %p364_p12, %s2028_s9, 1 }
  0x20   : > { %s367_s14 = scalar_select %p366_p13, %s2167_s26, 31 }
  0x21   : > { %s1482_s17 = sshll.u32 %s365_s13, 5  ;;  %v686_v9 = vld [vmem:[%s2527_s3] sm:$0xff]  ;;  %v688_v10 = vld [vmem:[%s2527_s3 + $0xc] sm:$0xff]  ;;  %v1909_v13 = vld [vmem:[%s2527_s3 + $0x8] ss:$12 sps:$4 sm:$0xff]  }
  0x22   : > { %s369_s20 = sadd.s32 %s1482_s17, %s367_s14  ;;  %v1907_v11 = vld [vmem:[%s2527_s3 + $0x4] ss:$12 sps:$4 sm:$0xff]   ;;  %v1524_v12 = vcombine.low %v686_v9, %v688_v10  ;;  %1799 = vmatprep.subr.bf16.mxu0 %v1909_v13  ;;  %v1910_v14 = vld [vmem:[%s2527_s3 + $0x1c] ss:$12 sps:$4 sm:$0xff]   ;;  %v1913_v16 = vld [vmem:[%s2527_s3 + $0x20] ss:$12 sps:$4 sm:$0xff]  }
  0x23   : > { %s2173_s21 = sshll.u32 %s369_s20, 2  ;;  %768 = vmatprep.subr.bf16.mxu1 %v1907_v11  ;;  %v1912_v15 = vld [vmem:[%s2527_s3 + $0x18] ss:$12 sps:$4 sm:$0xff]   ;;  %v2212_v18 = vld [vmem:[%s2528_s2] ss:$0 sm:$0xff]  ;;  %s2297_s17 = sand.u32 1, %s2016_s28  }
  0x24   : > { %s371_s25 = scalar_lea.vmem %s2526_s0, %s2173_s21  ;;  %769 = vmatpush1.bf16.msra.mxu1 %v1524_v12  ;;  %s2221_s30 = scalar_lea.vmem %s2515_s5, %s2173_s21 }
  0x25   : > { %v1899_v1 = vld [vmem:[%s371_s25] sm:$0xff]   ;;  %v1900_v2 = vld [vmem:[%s371_s25 + $0x8] sm:$0xff]   ;;  %v1901_v3 = vld [vmem:[%s371_s25 + $0x10] sm:$0xff]   ;;  %770 = vmatprep.subr.bf16.mxu1 %v1910_v14  ;;  %s1479_s20 = sshll.u32 %s2297_s17, 6  ;;  %s2310_s24 = scalar_lea.vmem %s2518_s8, %s2173_s21 }
  0x26   : > { %1783 = vmatprep.mubr.msk.bf16.mxu0 %vm467_vm0, %v1899_v1  ;;  %v1902_v4 = vld [vmem:[%s371_s25 + $0x18] sm:$0xff]   ;;  %v1903_v5 = vld [vmem:[%s371_s25 + $0x20] sm:$0xff]   ;;  %v1904_v6 = vld [vmem:[%s371_s25 + $0x28] sm:$0xff]   ;;  %s2320_s21 = scalar_lea.vmem [#allocation2], %s1479_s20  ;;  %s1228_s1 = scalar_lea.sflag [#allocation3], %s2297_s17 }
  0x27   : > { %1784 = vmatmul.mubr.msk.bf16.vlgmr.msra.gmra.mrb[0].mxu0 %vm467_vm0, %v1900_v2  ;;  %v1905_v7 = vld [vmem:[%s371_s25 + $0x30] sm:$0xff]   ;;  %v1906_v8 = vld [vmem:[%s371_s25 + $0x38] sm:$0xff]   ;;  %s2325_s25 = scalar_lea.vmem [#allocation4], %s1479_s20  ;;  %s1261_s20 = sshll.u32 %s2320_s21, 4  ;;  %s2417_s20 = int_to_ptr.vmem [resolvable:$true] %s1261_s20 }
  0x28   : > { %1787 = vmatprep.mubr.msk.bf16.mxu0 %vm467_vm0, %v1901_v3  ;;  %1800 = vmatpush3.bf16.msra.mxu0 %v1909_v13  ;;  %s2043_s0 = smov [#allocation2]  }
  0x29   : > { %1801 = vmatprep.subr.bf16.mxu0 %v1913_v16  ;;  %771 = vmatpush1.bf16.msra.mxu1 %v1912_v15  ;;  %s1918_s2 = sshll.u32 %s2043_s0, 4  ;;  %s1919_s2 = int_to_ptr.vmem [resolvable:$false] %s1918_s2 }
  0x2a   : > { %s1920_s3 = scalar_lea.vmem %s1919_s2, 2048  ;;  %p1921_p4 = scmp.lt.s32.totalorder %s2417_s20, %s1919_s2 }
  0x2c   : > { %1802 = vmatpush3.bf16.msra.mxu0 %v1913_v16 }
  0x2f   : > { %1788 = vmatmul.mubr.msk.bf16.gmra.mrb[4].mxu0 %vm467_vm0, %v1902_v4 }
  0x30   : > { %1791 = vmatprep.mubr.msk.bf16.mxu0 %vm467_vm0, %v1903_v5 }
  0x37   : > { %1792 = vmatmul.mubr.msk.bf16.gmra.mrb[8].mxu0 %vm467_vm0, %v1904_v6 }
  0x38   : > { %1795 = vmatprep.mubr.msk.bf16.mxu0 %vm467_vm0, %v1905_v7 }
  0x3f   : > { %1796 = vmatmul.mubr.msk.bf16.gmra.mrb[12].mxu0 %vm467_vm0, %v1906_v8 }
  0xfa   : > { %v1785_v19 = vpop.f32.mrb[0].mxu0 }
  0xfb   : > { %v535_v20 = vadd.f32 %v1785_v19, %v2212_v18  ;;  %v526_v21 = vpop.f32.mrb[1].mxu0 }
  0xfc   : > { %v527_v22 = vadd.f32 %v2212_v18, %v526_v21  ;;  %v1786_v23 = vpop.f32.mrb[2].mxu0 }
  0xfd   : > { %v591_v24 = vmax.f32 %v535_v20, 0.0  ;;  %v538_v25 = vadd.f32 %v1786_v23, %v2212_v18  ;;  %v529_v26 = vpop.f32.mrb[3].mxu0 }
  0xfe   : > { %v589_v27 = vmax.f32 %v527_v22, 0.0  ;;  %v530_v28 = vadd.f32 %v2212_v18, %v529_v26 }
  0xff   : > { %v1606_v29 = vpack.c.bf16 %v591_v24, %v591_v24  ;;  %v592_v30 = vmax.f32 %v538_v25, 0.0 }
 0x100   : > { %v1604_v31 = vpack.c.bf16 %v589_v27, %v589_v27  ;;  %v590_v32 = vmax.f32 %v530_v28, 0.0 }
 0x101   : > { %672 = vst.msk [vmem:[%s2221_s30 + $0x8] sm:$0xf] %vm669_vm1, %v1606_v29  ;;  %v606_v33 = vpack.c.bf16 %v592_v30, %v591_v24  ;;  %v1607_v34 = vpack.c.bf16 %v592_v30, %v592_v30 }
 0x102   : > { %670 = vst.msk [vmem:[%s2221_s30] sm:$0xf] %vm669_vm1, %v1604_v31  ;;  %v605_v35 = vpack.c.bf16 %v590_v32, %v589_v27  ;;  %v1605_v36 = vpack.c.bf16 %v590_v32, %v590_v32  ;;  %v1789_v37 = vpop.f32.mrb[4].mxu0  ;;  %v694_v31 = vld [vmem:[%s2514_s4] sm:$0x7] }
 0x103   : > { %673 = vst.msk [vmem:[%s2221_s30 + $0xc] sm:$0xf] %vm669_vm1, %v1607_v34  ;;  %v551_v38 = vadd.f32 %v1789_v37, %v2212_v18  ;;  %v542_v39 = vpop.f32.mrb[5].mxu0 }
 0x104   : > { %671 = vst.msk [vmem:[%s2221_s30 + $0x4] sm:$0xf] %vm669_vm1, %v1605_v36  ;;  %v543_v40 = vadd.f32 %v2212_v18, %v542_v39  ;;  %1530 = vmatmul.mubr.msk.bf16.vlgmr.msra.gmra.mrb[0].mxu1 %vm743_vm2, %v605_v35  ;;  %1803 = vmatprep.mubr.msk.bf16.mxu0 %vm743_vm2, %v605_v35  ;;  %v1790_v41 = vpop.f32.mrb[6].mxu0 }
 0x105   : > { %v595_v42 = vmax.f32 %v551_v38, 0.0  ;;  %v554_v43 = vadd.f32 %v1790_v41, %v2212_v18  ;;  %1804 = vmatmul.mubr.msk.bf16.vlgmr.msra.gmra.mrb[16].mxu0 %vm743_vm2, %v606_v33  ;;  %v545_v44 = vpop.f32.mrb[7].mxu0  ;;  %810 = vmatprep.mubr.bf16.mxu1 %v2042_v17 }
 0x106   : > { %v593_v45 = vmax.f32 %v543_v40, 0.0  ;;  %v546_v46 = vadd.f32 %v2212_v18, %v545_v44 }
 0x107   : > { %v1610_v47 = vpack.c.bf16 %v595_v42, %v595_v42  ;;  %v596_v48 = vmax.f32 %v554_v43, 0.0 }
 0x108   : > { %v1608_v49 = vpack.c.bf16 %v593_v45, %v593_v45  ;;  %v594_v50 = vmax.f32 %v546_v46, 0.0 }
 0x109   : > { %676 = vst.msk [vmem:[%s2221_s30 + $0x18] sm:$0xf] %vm669_vm1, %v1610_v47  ;;  %v608_v51 = vpack.c.bf16 %v596_v48, %v595_v42  ;;  %v1611_v52 = vpack.c.bf16 %v596_v48, %v596_v48 }
 0x10a   : > { %674 = vst.msk [vmem:[%s2221_s30 + $0x10] sm:$0xf] %vm669_vm1, %v1608_v49  ;;  %v607_v53 = vpack.c.bf16 %v594_v50, %v593_v45  ;;  %v1609_v54 = vpack.c.bf16 %v594_v50, %v594_v50  ;;  %v1793_v55 = vpop.f32.mrb[8].mxu0 }
 0x10b   : > { %677 = vst.msk [vmem:[%s2221_s30 + $0x1c] sm:$0xf] %vm669_vm1, %v1611_v52  ;;  %v567_v56 = vadd.f32 %v1793_v55, %v2212_v18  ;;  %v558_v57 = vpop.f32.mrb[9].mxu0 }
 0x10c   : > { %675 = vst.msk [vmem:[%s2221_s30 + $0x14] sm:$0xf] %vm669_vm1, %v1609_v54  ;;  %1531 = vmatmul.mubr.msk.bf16.gmra.mrb[4].mxu1 %vm743_vm2, %v606_v33  ;;  %1807 = vmatprep.mubr.msk.bf16.mxu0 %vm743_vm2, %v607_v53  ;;  %v559_v58 = vadd.f32 %v2212_v18, %v558_v57  ;;  %v1794_v59 = vpop.f32.mrb[10].mxu0 }
 0x10d   : > { %1808 = vmatmul.mubr.msk.bf16.gmra.mrb[20].mxu0 %vm743_vm2, %v608_v51  ;;  %v599_v60 = vmax.f32 %v567_v56, 0.0  ;;  %820 = vmatprep.mubr.bf16.mxu1 %v2042_v17  ;;  %v570_v61 = vadd.f32 %v1794_v59, %v2212_v18  ;;  %v561_v62 = vpop.f32.mrb[11].mxu0 }
 0x10e   : > { %v597_v63 = vmax.f32 %v559_v58, 0.0  ;;  %v562_v0 = vadd.f32 %v2212_v18, %v561_v62 }
 0x10f   : > { %v1614_v1 = vpack.c.bf16 %v599_v60, %v599_v60  ;;  %v600_v2 = vmax.f32 %v570_v61, 0.0 }
 0x110   : > { %v1612_v3 = vpack.c.bf16 %v597_v63, %v597_v63  ;;  %v598_v4 = vmax.f32 %v562_v0, 0.0 }
 0x111   : > { %680 = vst.msk [vmem:[%s2221_s30 + $0x28] sm:$0xf] %vm669_vm1, %v1614_v1  ;;  %v610_v5 = vpack.c.bf16 %v600_v2, %v599_v60  ;;  %v1615_v6 = vpack.c.bf16 %v600_v2, %v600_v2 }
 0x112   : > { %678 = vst.msk [vmem:[%s2221_s30 + $0x20] sm:$0xf] %vm669_vm1, %v1612_v3  ;;  %v609_v7 = vpack.c.bf16 %v598_v4, %v597_v63  ;;  %v1613_v8 = vpack.c.bf16 %v598_v4, %v598_v4  ;;  %v1797_v9 = vpop.f32.mrb[12].mxu0 }
 0x113   : > { %681 = vst.msk [vmem:[%s2221_s30 + $0x2c] sm:$0xf] %vm669_vm1, %v1615_v6  ;;  %v583_v10 = vadd.f32 %v1797_v9, %v2212_v18  ;;  %v574_v11 = vpop.f32.mrb[13].mxu0 }
 0x114   : > { %1532 = vmatmul.mubr.msk.bf16.gmra.mrb[8].mxu1 %vm743_vm2, %v607_v53  ;;  %679 = vst.msk [vmem:[%s2221_s30 + $0x24] sm:$0xf] %vm669_vm1, %v1613_v8  ;;  %1811 = vmatprep.mubr.msk.bf16.mxu0 %vm743_vm2, %v609_v7  ;;  %v575_v12 = vadd.f32 %v2212_v18, %v574_v11  ;;  %v1798_v13 = vpop.f32.mrb[14].mxu0 }
 0x115   : > { %830 = vmatprep.mubr.bf16.mxu1 %v2042_v17  ;;  %1812 = vmatmul.mubr.msk.bf16.gmra.mrb[24].mxu0 %vm743_vm2, %v610_v5  ;;  %v603_v14 = vmax.f32 %v583_v10, 0.0  ;;  %v586_v15 = vadd.f32 %v1798_v13, %v2212_v18  ;;  %v577_v16 = vpop.f32.mrb[15].mxu0 }
 0x116   : > { %v601_v19 = vmax.f32 %v575_v12, 0.0  ;;  %v578_v20 = vadd.f32 %v2212_v18, %v577_v16  ;;  %v696_v18 = vlaneseq }
 0x117   : > { %v1618_v21 = vpack.c.bf16 %v603_v14, %v603_v14  ;;  %v604_v22 = vmax.f32 %v586_v15, 0.0 }
 0x118   : > { %v1616_v23 = vpack.c.bf16 %v601_v19, %v601_v19  ;;  %v602_v24 = vmax.f32 %v578_v20, 0.0  ;;  %v697_v29 = vshrl.u32 %v696_v18, 7 }
 0x119   : > { %684 = vst.msk [vmem:[%s2221_s30 + $0x38] sm:$0xf] %vm669_vm1, %v1618_v21  ;;  %v612_v25 = vpack.c.bf16 %v604_v22, %v603_v14  ;;  %v1619_v26 = vpack.c.bf16 %v604_v22, %v604_v22 }
 0x11a   : > { %682 = vst.msk [vmem:[%s2221_s30 + $0x30] sm:$0xf] %vm669_vm1, %v1616_v23  ;;  %v611_v27 = vpack.c.bf16 %v602_v24, %v601_v19  ;;  %v1617_v28 = vpack.c.bf16 %v602_v24, %v602_v24  ;;  %v706_v30 = vsub.s32 2, %v697_v29  ;;  %v698_v32 = vsub.s32 0, %v697_v29 }
 0x11b   : > { %685 = vst.msk [vmem:[%s2221_s30 + $0x3c] sm:$0xf] %vm669_vm1, %v1619_v26  ;;  %v702_v33 = vsub.s32 1, %v697_v29 }
 0x11c   : > { %1533 = vmatmul.mubr.msk.bf16.gmra.mrb[12].mxu1 %vm743_vm2, %v608_v51  ;;  %683 = vst.msk [vmem:[%s2221_s30 + $0x34] sm:$0xf] %vm669_vm1, %v1617_v28  ;;  %1815 = vmatprep.mubr.msk.bf16.mxu0 %vm743_vm2, %v611_v27  ;;  %v2294_v34 = vrot.slane %v694_v31, %v706_v30  ;;  %v2299_v35 = vrot.slane %v694_v31, %v698_v32  ;;  %s1597_s30 = sshll.u32 %s2028_s9, 5  ;;  %s1279_s9 = sshll.u32 %s2325_s25, 4  ;;  %s2424_s9 = int_to_ptr.vmem [resolvable:$true] %s1279_s9 }
 0x11d   : > { %840 = vmatprep.mubr.bf16.mxu1 %v2042_v17  ;;  %1816 = vmatmul.mubr.msk.bf16.gmra.mrb[28].mxu0 %vm743_vm2, %v612_v25  ;;  %v2301_v36 = vrot.slane %v694_v31, %v702_v33  ;;  %s1258_s13 = sadd.s32 %s1597_s30, %s2167_s26  ;;  %s1914_s26 = scalar_lea.vmem %s2417_s20, 1024 }
 0x11e   : > { %s1598_s14 = sshll.u32 %s1258_s13, 6  ;;  %p1915_p0 = scmp.ne.s32.totalorder %s2417_s20, %s1914_s26 }
 0x11f   : > { %s2415_s22 = scalar_lea.hbm %s2516_s6, %s1598_s14  ;;  %s2422_s13 = scalar_lea.hbm %s2517_s7, %s1598_s14 }
 0x120   : > { %p1916_p1 = pnand %p1915_p0, %p2143_p3  ;;  %p1922_p5 = scmp.lt.s32.totalorder %s1920_s3, %s1914_s26 }
 0x122   : > { %p1917_p2 = pneg %p1916_p1  ;;  %p1923_p6 = por %p1922_p5, %p1921_p4 }
 0x124   : > { %1534 = vmatmul.mubr.msk.bf16.gmra.mrb[16].mxu1 %vm743_vm2, %v609_v7  ;;  %p1924_p7 = pnand %p1923_p6, %p1917_p2 }
 0x125   : > { %850 = vmatprep.mubr.bf16.mxu1 %v2042_v17 }
 0x12c   : > { %1535 = vmatmul.mubr.msk.bf16.gmra.mrb[20].mxu1 %vm743_vm2, %v610_v5 }
 0x12d   : > { %860 = vmatprep.mubr.bf16.mxu1 %v2042_v17 }
 0x134   : > { %1536 = vmatmul.mubr.msk.bf16.gmra.mrb[24].mxu1 %vm743_vm2, %v611_v27 }
 0x135   : > { %870 = vmatprep.mubr.bf16.mxu1 %v2042_v17 }
 0x13c   : > { %1537 = vmatmul.mubr.msk.bf16.gmra.mrb[28].mxu1 %vm743_vm2, %v612_v25 }
 0x1d7   : > { %v802_v17 = vpop.f32.mrb[0].mxu1 }
 0x1d8   : > { %v804_v37 = vpop.f32.mrb[1].mxu1  ;;  %v1805_v38 = vpop.f32.mrb[16].mxu0  ;;  %v803_v42 = vadd.f32 %v802_v17, %v2299_v35 }
 0x1d9   : > { %v924_v39 = vadd.f32 %v1805_v38, %v2294_v34  ;;  %v806_v40 = vpop.f32.mrb[2].mxu1  ;;  %v915_v41 = vpop.f32.mrb[17].mxu0  ;;  %v805_v47 = vadd.f32 %v804_v37, %v2301_v36 }
 0x1da   : > { %v807_v43 = vadd.f32 %v806_v40, %v2299_v35  ;;  %v916_v44 = vadd.f32 %v915_v41, %v2294_v34  ;;  %v808_v45 = vpop.f32.mrb[3].mxu1  ;;  %v1806_v46 = vpop.f32.mrb[18].mxu0 }
 0x1db   : > { %v1654_v48 = vpack.c.bf16 %v924_v39, %v924_v39  ;;  %v809_v49 = vadd.f32 %v808_v45, %v2301_v36  ;;  %v927_v50 = vadd.f32 %v1806_v46, %v2294_v34  ;;  %v918_v51 = vpop.f32.mrb[19].mxu0 }
 0x1dc   : > { %v1671_v52 = vpack.c.bf16 %v807_v43, %v803_v42  ;;  %v1652_v53 = vpack.c.bf16 %v916_v44, %v916_v44  ;;  %v919_v54 = vadd.f32 %v918_v51, %v2294_v34 }
 0x1dd   : > { %1204 = vst.msk [vmem:[%s2310_s24 + $0x8] sm:$0xf] %vm669_vm1, %v1654_v48  ;;  %v1711_v55 = vpack.c.bf16 %v809_v49, %v805_v47  ;;  %v1655_v56 = vpack.c.bf16 %v927_v50, %v927_v50 }
 0x1de   : > { %1672 = vst [vmem:[%s2320_s21] sm:$0xff] %v1671_v52   ;;  %1202 = vst.msk [vmem:[%s2310_s24] sm:$0xf] %vm669_vm1, %v1652_v53  ;;  %v1653_v57 = vpack.c.bf16 %v919_v54, %v919_v54 }
 0x1df   : > { %1712 = vst [vmem:[%s2325_s25] sm:$0xff] %v1711_v55   ;;  %1205 = vst.msk [vmem:[%s2310_s24 + $0xc] sm:$0xf] %vm669_vm1, %v1655_v56  ;;  %v812_v58 = vpop.f32.mrb[4].mxu1 }
 0x1e0   : > { %1203 = vst.msk [vmem:[%s2310_s24 + $0x4] sm:$0xf] %vm669_vm1, %v1653_v57  ;;  %v814_v59 = vpop.f32.mrb[5].mxu1  ;;  %v1809_v60 = vpop.f32.mrb[20].mxu0  ;;  %v813_v0 = vadd.f32 %v812_v58, %v2299_v35 }
 0x1e1   : > { %v816_v61 = vpop.f32.mrb[6].mxu1  ;;  %v940_v62 = vadd.f32 %v1809_v60, %v2294_v34  ;;  %v931_v63 = vpop.f32.mrb[21].mxu0  ;;  %v815_v5 = vadd.f32 %v814_v59, %v2301_v36 }
 0x1e2   : > { %v817_v1 = vadd.f32 %v816_v61, %v2299_v35  ;;  %v818_v2 = vpop.f32.mrb[7].mxu1  ;;  %v932_v3 = vadd.f32 %v931_v63, %v2294_v34  ;;  %v1810_v4 = vpop.f32.mrb[22].mxu0 }
 0x1e3   : > { %v1658_v6 = vpack.c.bf16 %v940_v62, %v940_v62  ;;  %v819_v7 = vadd.f32 %v818_v2, %v2301_v36  ;;  %v943_v8 = vadd.f32 %v1810_v4, %v2294_v34  ;;  %v934_v9 = vpop.f32.mrb[23].mxu0 }
 0x1e4   : > { %v1676_v10 = vpack.c.bf16 %v817_v1, %v813_v0  ;;  %v1656_v11 = vpack.c.bf16 %v932_v3, %v932_v3  ;;  %v935_v12 = vadd.f32 %v934_v9, %v2294_v34 }
 0x1e5   : > { %1208 = vst.msk [vmem:[%s2310_s24 + $0x18] sm:$0xf] %vm669_vm1, %v1658_v6  ;;  %v1716_v13 = vpack.c.bf16 %v819_v7, %v815_v5  ;;  %v1659_v14 = vpack.c.bf16 %v943_v8, %v943_v8 }
 0x1e6   : > { %1748 = vst [vmem:[%s2320_s21 + $0x8] sm:$0xff] %v1676_v10   ;;  %1206 = vst.msk [vmem:[%s2310_s24 + $0x10] sm:$0xf] %vm669_vm1, %v1656_v11  ;;  %v1657_v15 = vpack.c.bf16 %v935_v12, %v935_v12 }
 0x1e7   : > { %1755 = vst [vmem:[%s2325_s25 + $0x8] sm:$0xff] %v1716_v13   ;;  %1209 = vst.msk [vmem:[%s2310_s24 + $0x1c] sm:$0xf] %vm669_vm1, %v1659_v14  ;;  %v822_v16 = vpop.f32.mrb[8].mxu1 }
 0x1e8   : > { %1207 = vst.msk [vmem:[%s2310_s24 + $0x14] sm:$0xf] %vm669_vm1, %v1657_v15  ;;  %v824_v19 = vpop.f32.mrb[9].mxu1  ;;  %v1813_v20 = vpop.f32.mrb[24].mxu0  ;;  %v823_v24 = vadd.f32 %v822_v16, %v2299_v35 }
 0x1e9   : > { %v826_v21 = vpop.f32.mrb[10].mxu1  ;;  %v956_v22 = vadd.f32 %v1813_v20, %v2294_v34  ;;  %v947_v23 = vpop.f32.mrb[25].mxu0  ;;  %v825_v18 = vadd.f32 %v824_v19, %v2301_v36 }
 0x1ea   : > { %v827_v25 = vadd.f32 %v826_v21, %v2299_v35  ;;  %v828_v26 = vpop.f32.mrb[11].mxu1  ;;  %v948_v27 = vadd.f32 %v947_v23, %v2294_v34  ;;  %v1814_v28 = vpop.f32.mrb[26].mxu0 }
 0x1eb   : > { %v829_v29 = vadd.f32 %v828_v26, %v2301_v36  ;;  %v1662_v30 = vpack.c.bf16 %v956_v22, %v956_v22  ;;  %v959_v31 = vadd.f32 %v1814_v28, %v2294_v34  ;;  %v950_v32 = vpop.f32.mrb[27].mxu0 }
 0x1ec   : > { %v1681_v33 = vpack.c.bf16 %v827_v25, %v823_v24  ;;  %v1660_v17 = vpack.c.bf16 %v948_v27, %v948_v27  ;;  %v951_v37 = vadd.f32 %v950_v32, %v2294_v34 }
 0x1ed   : > { %v1721_v38 = vpack.c.bf16 %v829_v29, %v825_v18  ;;  %1212 = vst.msk [vmem:[%s2310_s24 + $0x28] sm:$0xf] %vm669_vm1, %v1662_v30  ;;  %v1663_v39 = vpack.c.bf16 %v959_v31, %v959_v31 }
 0x1ee   : > { %1749 = vst [vmem:[%s2320_s21 + $0x10] sm:$0xff] %v1681_v33   ;;  %1210 = vst.msk [vmem:[%s2310_s24 + $0x20] sm:$0xf] %vm669_vm1, %v1660_v17  ;;  %v1661_v40 = vpack.c.bf16 %v951_v37, %v951_v37 }
 0x1ef   : > { %1756 = vst [vmem:[%s2325_s25 + $0x10] sm:$0xff] %v1721_v38   ;;  %v832_v41 = vpop.f32.mrb[12].mxu1  ;;  %1213 = vst.msk [vmem:[%s2310_s24 + $0x2c] sm:$0xf] %vm669_vm1, %v1663_v39 }
 0x1f0   : > { %v834_v42 = vpop.f32.mrb[13].mxu1  ;;  %1211 = vst.msk [vmem:[%s2310_s24 + $0x24] sm:$0xf] %vm669_vm1, %v1661_v40  ;;  %v1817_v43 = vpop.f32.mrb[28].mxu0  ;;  %v833_v47 = vadd.f32 %v832_v41, %v2299_v35 }
 0x1f1   : > { %v836_v44 = vpop.f32.mrb[14].mxu1  ;;  %v972_v45 = vadd.f32 %v1817_v43, %v2294_v34  ;;  %v963_v46 = vpop.f32.mrb[29].mxu0  ;;  %v835_v52 = vadd.f32 %v834_v42, %v2301_v36 }
 0x1f2   : > { %v837_v48 = vadd.f32 %v836_v44, %v2299_v35  ;;  %v838_v49 = vpop.f32.mrb[15].mxu1  ;;  %v964_v50 = vadd.f32 %v963_v46, %v2294_v34  ;;  %v1818_v51 = vpop.f32.mrb[30].mxu0 }
 0x1f3   : > { %v839_v53 = vadd.f32 %v838_v49, %v2301_v36  ;;  %v1666_v54 = vpack.c.bf16 %v972_v45, %v972_v45  ;;  %v975_v55 = vadd.f32 %v1818_v51, %v2294_v34  ;;  %v966_v56 = vpop.f32.mrb[31].mxu0 }
 0x1f4   : > { %v1686_v57 = vpack.c.bf16 %v837_v48, %v833_v47  ;;  %v1664_v58 = vpack.c.bf16 %v964_v50, %v964_v50  ;;  %v967_v59 = vadd.f32 %v966_v56, %v2294_v34 }
 0x1f5   : > { %v1726_v60 = vpack.c.bf16 %v839_v53, %v835_v52  ;;  %1216 = vst.msk [vmem:[%s2310_s24 + $0x38] sm:$0xf] %vm669_vm1, %v1666_v54  ;;  %v1667_v61 = vpack.c.bf16 %v975_v55, %v975_v55 }
 0x1f6   : > { %1750 = vst [vmem:[%s2320_s21 + $0x18] sm:$0xff] %v1686_v57   ;;  %1214 = vst.msk [vmem:[%s2310_s24 + $0x30] sm:$0xf] %vm669_vm1, %v1664_v58  ;;  %v1665_v62 = vpack.c.bf16 %v967_v59, %v967_v59 }
 0x1f7   : > { %1757 = vst [vmem:[%s2325_s25 + $0x18] sm:$0xff] %v1726_v60   ;;  %v842_v63 = vpop.f32.mrb[16].mxu1  ;;  %1217 = vst.msk [vmem:[%s2310_s24 + $0x3c] sm:$0xf] %vm669_vm1, %v1667_v61 }
 0x1f8   : > { %v844_v0 = vpop.f32.mrb[17].mxu1  ;;  %1215 = vst.msk [vmem:[%s2310_s24 + $0x34] sm:$0xf] %vm669_vm1, %v1665_v62  ;;  %v843_v34 = vadd.f32 %v842_v63, %v2299_v35 }
 0x1f9   : > { %v846_v1 = vpop.f32.mrb[18].mxu1  ;;  %v845_v4 = vadd.f32 %v844_v0, %v2301_v36 }
 0x1fa   : > { %v847_v2 = vadd.f32 %v846_v1, %v2299_v35  ;;  %v848_v3 = vpop.f32.mrb[19].mxu1 }
 0x1fb   : > { %v849_v5 = vadd.f32 %v848_v3, %v2301_v36 }
 0x1fc   : > { %v1691_v6 = vpack.c.bf16 %v847_v2, %v843_v34 }
 0x1fd   : > { %v1731_v7 = vpack.c.bf16 %v849_v5, %v845_v4 }
 0x1fe   : > { %1751 = vst [vmem:[%s2320_s21 + $0x20] sm:$0xff] %v1691_v6  }
 0x1ff   : > { %1758 = vst [vmem:[%s2325_s25 + $0x20] sm:$0xff] %v1731_v7   ;;  %v852_v8 = vpop.f32.mrb[20].mxu1 }
 0x200   : > { %v854_v9 = vpop.f32.mrb[21].mxu1  ;;  %v853_v11 = vadd.f32 %v852_v8, %v2299_v35 }
 0x201   : > { %v856_v10 = vpop.f32.mrb[22].mxu1  ;;  %v855_v14 = vadd.f32 %v854_v9, %v2301_v36 }
 0x202   : > { %v857_v12 = vadd.f32 %v856_v10, %v2299_v35  ;;  %v858_v13 = vpop.f32.mrb[23].mxu1 }
 0x203   : > { %v859_v15 = vadd.f32 %v858_v13, %v2301_v36 }
 0x204   : > { %v1696_v16 = vpack.c.bf16 %v857_v12, %v853_v11 }
 0x205   : > { %v1736_v19 = vpack.c.bf16 %v859_v15, %v855_v14 }
 0x206   : > { %1752 = vst [vmem:[%s2320_s21 + $0x28] sm:$0xff] %v1696_v16  }
 0x207   : > { %1759 = vst [vmem:[%s2325_s25 + $0x28] sm:$0xff] %v1736_v19   ;;  %v862_v20 = vpop.f32.mrb[24].mxu1 }
 0x208   : > { %v864_v21 = vpop.f32.mrb[25].mxu1  ;;  %v863_v23 = vadd.f32 %v862_v20, %v2299_v35 }
 0x209   : > { %v866_v22 = vpop.f32.mrb[26].mxu1  ;;  %v865_v26 = vadd.f32 %v864_v21, %v2301_v36 }
 0x20a   : > { %v867_v24 = vadd.f32 %v866_v22, %v2299_v35  ;;  %v868_v25 = vpop.f32.mrb[27].mxu1 }
 0x20b   : > { %v869_v27 = vadd.f32 %v868_v25, %v2301_v36 }
 0x20c   : > { %v1701_v28 = vpack.c.bf16 %v867_v24, %v863_v23 }
 0x20d   : > { %v1741_v18 = vpack.c.bf16 %v869_v27, %v865_v26 }
 0x20e   : > { %1753 = vst [vmem:[%s2320_s21 + $0x30] sm:$0xff] %v1701_v28  }
 0x20f   : > { %1760 = vst [vmem:[%s2325_s25 + $0x30] sm:$0xff] %v1741_v18   ;;  %v872_v29 = vpop.f32.mrb[28].mxu1 }
 0x210   : > { %v874_v30 = vpop.f32.mrb[29].mxu1  ;;  %v873_v32 = vadd.f32 %v872_v29, %v2299_v35 }
 0x211   : > { %v876_v31 = vpop.f32.mrb[30].mxu1  ;;  %v875_v37 = vadd.f32 %v874_v30, %v2301_v36 }
 0x212   : > { %v877_v33 = vadd.f32 %v876_v31, %v2299_v35  ;;  %v878_v17 = vpop.f32.mrb[31].mxu1 }
 0x213   : > { %v879_v38 = vadd.f32 %v878_v17, %v2301_v36 }
 0x214   : > { %v1706_v39 = vpack.c.bf16 %v877_v33, %v873_v32 }
 0x215   : > { %v1746_v40 = vpack.c.bf16 %v879_v38, %v875_v37 }
 0x216   : > { %1754 = vst [vmem:[%s2320_s21 + $0x38] sm:$0xff] %v1706_v39  }
 0x217   : > { %1761 = vst [vmem:[%s2325_s25 + $0x38] sm:$0xff] %v1746_v40  }
 0x218   : > { %1927 = shalt.err (!%p1924_p7)
}
 0x219   : > { %s1928_s21 = scalar_lea.hbm %s2415_s22, 1024  ;;  %s1932_s24 = scalar_lea.hbm %s2516_s6, 4096 }
 0x21a   : > { %p1929_p9 = scmp.ne.s32.totalorder %s2415_s22, %s1928_s21  ;;  %p1933_p12 = scmp.lt.u32.totalorder %s2415_s22, %s2516_s6 }
 0x21b   : > { %p1934_p13 = scmp.lt.u32.totalorder %s1932_s24, %s1928_s21  ;;  %p1936_p1 = scmp.lt.u32.totalorder %s1928_s21, %s2415_s22 }
 0x21c   : > { %p1930_p10 = pnand %p1929_p9, %p2143_p3 }
 0x21d   : > { %p1935_p0 = por %p1934_p13, %p1933_p12 }
 0x21e   : > { %p1931_p11 = pneg %p1930_p10 }
 0x21f   : > { %p1937_p2 = por %p1936_p1, %p1935_p0 }
 0x221   : > { %p1938_p4 = pnand %p1937_p2, %p1931_p11 }
 0x223   : > { %1941 = shalt.err (!%p1938_p4)
}
 0x224   : > { %s2044_s3 = smov 64   ;;  %s2045_s26 = smov 4  }
 0x225   : > { %1819 = dma.vmem_to_hbm [thread:$0]  (%p2143_p3), %s2417_s20, 1024, %s2415_s22, %s1228_s1, %s2044_s3, %s2044_s3, %s2045_s26  }
 0x226   : > { %s1233_s0 = scalar_lea.sflag [#allocation5], %s2297_s17  ;;  %s1942_s21 = scalar_lea.vmem %s2424_s9, 1024 }
 0x227   : > { %p1943_p5 = scmp.ne.s32.totalorder %s2424_s9, %s1942_s21  ;;  %s2046_s25 = smov [#allocation4]  }
 0x228   : > { %s1946_s14 = sshll.u32 %s2046_s25, 4  ;;  %s1947_s14 = int_to_ptr.vmem [resolvable:$false] %s1946_s14 }
 0x229   : > { %p1944_p6 = pnand %p1943_p5, %p2143_p3  ;;  %s1948_s24 = scalar_lea.vmem %s1947_s14, 2048 }
 0x22a   : > { %p1949_p9 = scmp.lt.s32.totalorder %s2424_s9, %s1947_s14  ;;  %p1950_p10 = scmp.lt.s32.totalorder %s1948_s24, %s1942_s21 }
 0x22b   : > { %p1945_p7 = pneg %p1944_p6 }
 0x22c   : > { %p1951_p11 = por %p1950_p10, %p1949_p9 }
 0x22e   : > { %p1952_p12 = pnand %p1951_p11, %p1945_p7 }
 0x230   : > { %1955 = shalt.err (!%p1952_p12)
}
 0x231   : > { %s1956_s1 = scalar_lea.hbm %s2422_s13, 1024  ;;  %s1960_s30 = scalar_lea.hbm %s2517_s7, 4096 }
 0x232   : > { %p1957_p13 = scmp.ne.s32.totalorder %s2422_s13, %s1956_s1  ;;  %p1961_p2 = scmp.lt.u32.totalorder %s2422_s13, %s2517_s7 }
 0x233   : > { %p1962_p4 = scmp.lt.u32.totalorder %s1960_s30, %s1956_s1  ;;  %p1964_p6 = scmp.lt.u32.totalorder %s1956_s1, %s2422_s13 }
 0x234   : > { %p1958_p0 = pnand %p1957_p13, %p2143_p3 }
 0x235   : > { %p1963_p5 = por %p1962_p4, %p1961_p2 }
 0x236   : > { %p1959_p1 = pneg %p1958_p0 }
 0x237   : > { %p1965_p7 = por %p1964_p6, %p1963_p5 }
 0x239   : > { %p1966_p9 = pnand %p1965_p7, %p1959_p1 }
 0x23b   : > { %1969 = shalt.err (!%p1966_p9)
}
 0x23c   : > { %1820 = dma.vmem_to_hbm [thread:$0]  (%p2143_p3), %s2424_s9, 1024, %s2422_s13, %s1233_s0, %s2044_s3, %s2044_s3, %s2045_s26  }
 0x23d PF: > { %p1830_p10 = scmp.ge.s32.totalorder %s2040_s12, 2  ;;  %s1310_s21 = sand.u32 1, %s2012_s27  }
 0x23e   : > { %s1311_s14 = scalar_lea.sflag [#allocation3], %s1310_s21 }
 0x23f   : > { %p1824_p11 = pnand %p1830_p10, %p2152_p8 }
 0x241   : > { %2003 = dma.done.wait (!%p1824_p11), %s1311_s14, 1024  }
 0x242   : > { %2005 = vsyncadd (!%p1824_p11), %s1311_s14, 4294966272  ;;  %s1320_s18 = scalar_lea.sflag [#allocation5], %s1310_s21 }
 0x243   : > { %2007 = dma.done.wait (!%p1824_p11), %s1320_s18, 1024  }
 0x244   : > { %2009 = vsyncadd (!%p1824_p11), %s1320_s18, 4294966272  ;;  %s25_s12 = sadd.s32 1, %s2040_s12   ;;  %s2529_s27 = smov %s2016_s28 }
 0x245   : > { %p22_p12 = scmp.ge.s32.totalorder %s25_s12, 6   ;;  %s2530_s28 = smov %s2020_s29 }
 0x246   : > { %s2531_s29 = smov %s2161_s23  ;;  %s2532_s30 = smov %s2032_s10 }
 0x247   : > { %s2533_s9 = smov %s2036_s11  ;;  %s2534_s10 = smov %s2537_s15 }
 0x248   : > { %s2535_s11 = smov %s2541_s16  ;;  %24 = sbr.rel (!%p22_p12) target bundleno = 12 (0xc), region = 116 }
 0x24f   :  { %1337 = vsyncpa [#allocation3], 1 }
 0x250   :  { %1339 = vsyncpa [#allocation3 + $0x1], 1 }
 0x251   :  { %1340 = vsyncpa [#allocation5], 1 }
 0x252   :  { %1342 = vsyncpa [#allocation5 + $0x1], 1 }

</bundles_post_ra>
